<compile_context>
chip_gen: v5e
topology: v5e:2x2
jax: 0.10.0
libtpu: 0.0.40
codegen_flags: <defaults>
</compile_context>

<pallas_src>
import math

import jax
import jax.numpy as jnp
from jax import lax
from jax.experimental import pallas as pl
from jax.experimental.pallas import tpu as pltpu

_EPS = 1e-12            # torch.nn.functional.normalize default eps
_EPS2 = _EPS * _EPS     # clamp applied to the (non-negative) sum of squares


def _ceil_to(v, m):
    return ((v + m - 1) // m) * m


def _vmem_budget():
    """Returns (vmem_limit_bytes, byte budget the tile planner may fill)."""
    cap = 64 << 20                      # conservative default (v7x per-core VMEM)
    try:
        info = pltpu.get_tpu_info()
        cap = int(getattr(info, "vmem_capacity_bytes", cap) or cap)
    except Exception:
        pass
    # 75% of physical VMEM as the Mosaic scoped limit (96 MiB on v5e/v6e,
    # 48 MiB on v7x); 55% as the budget for pipeline buffers + f32 temporaries.
    return (3 * cap) // 4, (55 * cap) // 100


# ----------------------------------------------------------------------------
# Kernels
# ----------------------------------------------------------------------------
def _l2_normalize_channels_kernel(x_ref, o_ref):
    # Block: (TN, C, TS). Channel reduction fully inside the block; rsqrt on EUP.
    x = x_ref[...]
    xf = x.astype(jnp.float32)
    ss = jnp.sum(xf * xf, axis=1, keepdims=True)                 # (TN, 1, TS)
    inv = lax.rsqrt(jnp.maximum(ss, jnp.float32(_EPS2)))
    if o_ref.dtype == jnp.float32:
        o_ref[...] = xf * inv
    else:
        # Low-precision inputs: reduce in f32 but scale in the native dtype so
        # no full f32 copy of the block has to stay live (halves VMEM pressure).
        o_ref[...] = (x * inv.astype(x.dtype)).astype(o_ref.dtype)


def _l2_normalize_rows_kernel(x_ref, o_ref):
    # Block: (TR, C), C lane-major. Used for 2-D (N, C) embeddings.
    x = x_ref[...]
    xf = x.astype(jnp.float32)
    ss = jnp.sum(xf * xf, axis=-1, keepdims=True)                # (TR, 1)
    inv = lax.rsqrt(jnp.maximum(ss, jnp.float32(_EPS2)))
    if o_ref.dtype == jnp.float32:
        o_ref[...] = xf * inv
    else:
        o_ref[...] = (x * inv.astype(x.dtype)).astype(o_ref.dtype)


def _make_sumsq_kernel(c_total, tc):
    """Channel-tiled sum of squares with a VMEM-resident (1, 1, TS) accumulator."""
    def kernel(x_ref, ss_ref):
        k = pl.program_id(2)

        @pl.when(k == 0)
        def _():
            ss_ref[...] = jnp.zeros_like(ss_ref)

        xf = x_ref[...].astype(jnp.float32)
        if c_total % tc != 0:
            # Final partial channel block: its padded rows hold unspecified
            # VMEM data and must not leak into the reduction.
            ch = k * tc + lax.broadcasted_iota(jnp.int32, xf.shape, 1)
            xf = jnp.where(ch < c_total, xf, 0.0)
        ss_ref[...] += jnp.sum(xf * xf, axis=1, keepdims=True)
    return kernel


def _scale_kernel(x_ref, ss_ref, o_ref):
    inv = lax.rsqrt(jnp.maximum(ss_ref[...], jnp.float32(_EPS2)))
    x = x_ref[...]
    if o_ref.dtype == jnp.float32:
        o_ref[...] = x.astype(jnp.float32) * inv
    else:
        o_ref[...] = (x * inv.astype(x.dtype)).astype(o_ref.dtype)


# ----------------------------------------------------------------------------
# Tile planners (all sizes in bytes, derived from real VMEM capacity)
# ----------------------------------------------------------------------------
def _plan_channel_blocks(n, c, s, dtype, work_budget):
    """Pick the (TN, TS) of a (TN, C, TS) fused block, or None if C is too wide."""
    itemsize = jnp.dtype(dtype).itemsize
    pack = max(1, 4 // itemsize)              # sub-32-bit dtypes pack along sublanes
    c_nat = _ceil_to(c, 8 * pack)             # sublane-padded C, native layout
    c_f32 = _ceil_to(c, 8)                    # sublane-padded C for f32 temporaries
    # Bytes per 128-lane chunk of one batch row: 2 input + 2 output pipeline
    # buffers (native dtype) plus ~2 f32-block temporaries (upcast / squares).
    unit = 128 * (4 * c_nat * itemsize + 2 * c_f32 * 4)
    max_units = work_budget // unit
    if max_units < 1:
        return None                           # C too wide -> channel-tiled path
    s_units = pl.cdiv(s, 128)
    if max_units >= s_units:
        ts = s                                # full spatial extent (always legal)
        tn = min(n, max(1, max_units // s_units))
    else:
        tn = 1
        ts = max_units * 128                  # lane-dense 128-multiple, < S
    # Guarantee >= 2 grid steps when possible: enables DMA/compute overlap and
    # lets both v7x TensorCores get work for single-image inputs.
    if pl.cdiv(n, tn) * pl.cdiv(s, ts) == 1:
        if n >= 2:
            tn = pl.cdiv(n, 2)
        elif s >= 256:
            ts = _ceil_to(pl.cdiv(s, 2), 128)
    return tn, ts


def _plan_row_blocks(n, c, dtype, work_budget):
    """Row tile TR for the 2-D (N, C) path, or None if C alone overflows VMEM."""
    itemsize = jnp.dtype(dtype).itemsize
    c_lanes = _ceil_to(c, 128)
    unit = 8 * c_lanes * (4 * itemsize + 2 * 4)       # one 8-row sublane group
    max_units = work_budget // unit
    if max_units < 1:
        return None
    tr = n if max_units * 8 >= n else max_units * 8
    if pl.cdiv(n, tr) == 1 and n >= 16:
        tr = _ceil_to(pl.cdiv(n, 2), 8)               # >= 2 steps for megacore
    return tr


# ----------------------------------------------------------------------------
# pallas_call wrappers
# ----------------------------------------------------------------------------
def _normalize_channels_fused(x3, tn, ts, vmem_limit):
    n, c, s = x3.shape
    itemsize = jnp.dtype(x3.dtype).itemsize
    cost = pl.CostEstimate(flops=3 * x3.size,
                           transcendentals=x3.size // max(c, 1),
                           bytes_accessed=2 * x3.size * itemsize)
    return pl.pallas_call(
        _l2_normalize_channels_kernel,
        out_shape=jax.ShapeDtypeStruct((n, c, s), x3.dtype),
        grid_spec=pltpu.PrefetchScalarGridSpec(
            num_scalar_prefetch=0,
            grid=(pl.cdiv(n, tn), pl.cdiv(s, ts)),
            in_specs=[pl.BlockSpec((tn, c, ts), lambda i, j: (i, 0, j))],
            out_specs=pl.BlockSpec((tn, c, ts), lambda i, j: (i, 0, j)),
        ),
        compiler_params=pltpu.CompilerParams(
            dimension_semantics=("parallel", "parallel"),
            vmem_limit_bytes=vmem_limit,
        ),
        cost_estimate=cost,
    )(x3)


def _normalize_rows(x2, tr, vmem_limit):
    n, c = x2.shape
    itemsize = jnp.dtype(x2.dtype).itemsize
    cost = pl.CostEstimate(flops=3 * x2.size,
                           transcendentals=n,
                           bytes_accessed=2 * x2.size * itemsize)
    return pl.pallas_call(
        _l2_normalize_rows_kernel,
        out_shape=jax.ShapeDtypeStruct((n, c), x2.dtype),
        grid_spec=pltpu.PrefetchScalarGridSpec(
            num_scalar_prefetch=0,
            grid=(pl.cdiv(n, tr),),
            in_specs=[pl.BlockSpec((tr, c), lambda i: (i, 0))],
            out_specs=pl.BlockSpec((tr, c), lambda i: (i, 0)),
        ),
        compiler_params=pltpu.CompilerParams(
            dimension_semantics=("parallel",),
            vmem_limit_bytes=vmem_limit,
        ),
        cost_estimate=cost,
    )(x2)


def _normalize_channel_tiled(x3, work_budget, vmem_limit):
    """Two-pass path for channel dims too wide for a fused (1, C, 128) block."""
    n, c, s = x3.shape
    itemsize = jnp.dtype(x3.dtype).itemsize
    ts = s if s <= 512 else 512
    lanes = _ceil_to(min(s, 512), 128)
    per_row = lanes * (4 * itemsize + 2 * 4)
    tc = max(32, (int(work_budget // per_row) // 32) * 32)
    tc = min(tc, c)
    grid = (n, pl.cdiv(s, ts), pl.cdiv(c, tc))

    # Pass 1: sum of squares over channels, accumulated across the last
    # ("arbitrary") grid axis into a resident (1, 1, TS) f32 block.
    ss = pl.pallas_call(
        _make_sumsq_kernel(c, tc),
        out_shape=jax.ShapeDtypeStruct((n, 1, s), jnp.float32),
        grid_spec=pltpu.PrefetchScalarGridSpec(
            num_scalar_prefetch=0,
            grid=grid,
            in_specs=[pl.BlockSpec((1, tc, ts), lambda b, j, k: (b, k, j))],
            out_specs=pl.BlockSpec((1, 1, ts), lambda b, j, k: (b, 0, j)),
        ),
        compiler_params=pltpu.CompilerParams(
            dimension_semantics=("parallel", "parallel", "arbitrary"),
            vmem_limit_bytes=vmem_limit,
        ),
        cost_estimate=pl.CostEstimate(flops=2 * x3.size, transcendentals=0,
                                      bytes_accessed=x3.size * itemsize + n * s * 4),
    )(x3)

    # Pass 2: elementwise scale by rsqrt(clamped sum of squares).
    return pl.pallas_call(
        _scale_kernel,
        out_shape=jax.ShapeDtypeStruct((n, c, s), x3.dtype),
        grid_spec=pltpu.PrefetchScalarGridSpec(
            num_scalar_prefetch=0,
            grid=grid,
            in_specs=[pl.BlockSpec((1, tc, ts), lambda b, j, k: (b, k, j)),
                      pl.BlockSpec((1, 1, ts), lambda b, j, k: (b, 0, j))],
            out_specs=pl.BlockSpec((1, tc, ts), lambda b, j, k: (b, k, j)),
        ),
        compiler_params=pltpu.CompilerParams(
            dimension_semantics=("parallel", "parallel", "parallel"),
            vmem_limit_bytes=vmem_limit,
        ),
        cost_estimate=pl.CostEstimate(flops=x3.size, transcendentals=n * s,
                                      bytes_accessed=2 * x3.size * itemsize + n * s * 4),
    )(x3, ss)


# ----------------------------------------------------------------------------
# Public wrapper (matches Normalize.forward)
# ----------------------------------------------------------------------------
def normalize(x, *, _work_bytes_override=None):
    """L2-normalize along dim=1; equivalent to F.normalize(x, p=2.0, dim=1)."""
    if x.ndim < 2:
        raise ValueError("normalize expects an input with at least 2 dims (dim=1)")
    orig_shape = x.shape
    if x.size == 0:
        return x

    vmem_limit, work_budget = _vmem_budget()
    if _work_bytes_override is not None:
        work_budget = int(_work_bytes_override)

    n, c = orig_shape[0], orig_shape[1]

    if x.ndim == 2:
        tr = _plan_row_blocks(n, c, x.dtype, work_budget)
        if tr is None:
            # TODO(synk): channel-tiled Pallas path for 2-D inputs whose feature
            # dim alone overflows VMEM; plain XLA fallback for that corner case.
            xf = x.astype(jnp.float32)
            ss = jnp.sum(xf * xf, axis=1, keepdims=True)
            return (xf * lax.rsqrt(jnp.maximum(ss, jnp.float32(_EPS2)))).astype(x.dtype)
        return _normalize_rows(x, tr, vmem_limit)

    s = math.prod(orig_shape[2:])
    x3 = x.reshape(n, c, s)
    plan = _plan_channel_blocks(n, c, s, x.dtype, work_budget)
    if plan is None:
        out3 = _normalize_channel_tiled(x3, work_budget, vmem_limit)
    else:
        tn, ts = plan
        out3 = _normalize_channels_fused(x3, tn, ts, vmem_limit)
    return out3.reshape(orig_shape)


if __name__ == "__main__":
    key = jax.random.PRNGKey(0)
    k1, k2, k3, k4 = jax.random.split(key, 4)

    def ref_normalize(x):
        xf = x.astype(jnp.float32)
        nrm = jnp.sqrt(jnp.sum(xf * xf, axis=1, keepdims=True))
        return (xf / jnp.maximum(nrm, _EPS)).astype(x.dtype)

    cases = []
    # Primary NCHW case implied by the module spec.
    x = jax.random.normal(k1, (2, 4, 16, 16), dtype=jnp.float32)
    cases.append((normalize(x), ref_normalize(x)))
    # Lane-sparse spatial size (7x7 feature map, S not a multiple of 128).
    x2 = jax.random.normal(k2, (2, 3, 7, 7), dtype=jnp.float32)
    cases.append((normalize(x2), ref_normalize(x2)))
    # 2-D embedding case (dedicated lane-major rows path).
    x3 = jax.random.normal(k3, (8, 256), dtype=jnp.float32)
    cases.append((normalize(x3), ref_normalize(x3)))
    # Channel-tiled two-pass path, forced via a tiny planning budget.
    x4 = jax.random.normal(k4, (2, 250, 8, 10), dtype=jnp.float32)
    cases.append((normalize(x4, _work_bytes_override=200_000), ref_normalize(x4)))

    ok = True
    for out, ref in cases:
        out = jax.block_until_ready(out)
        ok = ok and (out.shape == ref.shape) and (out.dtype == ref.dtype)
        ok = ok and bool(jnp.allclose(out, ref, atol=1e-5, rtol=1e-5))
    assert ok, "Pallas normalize does not match the reference"
    print("KERNEL_OK")
</pallas_src>

<mosaic_0001>
module attributes {stable_mosaic.version = 11 : i64} {
  func.func @_l2_normalize_channels_kernel(%arg0: i32, %arg1: i32, %arg2: memref<1x4x256xf32, #tpu.memory_space<vmem>>, %arg3: memref<1x4x256xf32, #tpu.memory_space<vmem>>) attributes {dimension_semantics = [#tpu.dimension_semantics<parallel>, #tpu.dimension_semantics<parallel>], iteration_bounds = array<i64: 2, 1>, scalar_prefetch = 0 : i64, scratch_operands = 0 : i64, tpu.core_type = #tpu.core_type<tc>, window_params = [{transform_indices = @transform_0, window_bounds = array<i64: 1, 4, 256>}, {transform_indices = @transform_1, window_bounds = array<i64: 1, 4, 256>}]} {
    %c0 = arith.constant 0 : index
    %c0_0 = arith.constant 0 : index
    %c0_1 = arith.constant 0 : index
    %0 = vector.load %arg2[%c0, %c0_0, %c0_1] : memref<1x4x256xf32, #tpu.memory_space<vmem>>, vector<1x4x256xf32>
    %1 = arith.mulf %0, %0 : vector<1x4x256xf32>
    %cst = arith.constant dense<0.000000e+00> : vector<1x256xf32>
    %2 = vector.multi_reduction <add>, %1, %cst [1] : vector<1x4x256xf32> to vector<1x256xf32>
    %3 = vector.shape_cast %2 : vector<1x256xf32> to vector<1x1x256xf32>
    %cst_2 = arith.constant 1.000000e-24 : f32
    %4 = vector.broadcast %cst_2 : f32 to vector<1x1x256xf32>
    %5 = arith.maximumf %3, %4 : vector<1x1x256xf32>
    %6 = math.rsqrt %5 : vector<1x1x256xf32>
    %7 = vector.broadcast %6 : vector<1x1x256xf32> to vector<1x4x256xf32>
    %8 = arith.mulf %0, %7 : vector<1x4x256xf32>
    %c0_3 = arith.constant 0 : index
    %c0_4 = arith.constant 0 : index
    %c0_5 = arith.constant 0 : index
    %9 = vector.load %arg3[%c0_3, %c0_4, %c0_5] : memref<1x4x256xf32, #tpu.memory_space<vmem>>, vector<1x4x256xf32>
    tpu.vector_store %arg3[%c0_3, %c0_4, %c0_5], %8 {strides = array<i32>} : memref<1x4x256xf32, #tpu.memory_space<vmem>>, vector<1x4x256xf32>,
    return
  }
  func.func @transform_0(%arg0: i32, %arg1: i32) -> (i32, i32, i32) {
    %c0_i32 = arith.constant 0 : i32
    %c0_i32_0 = arith.constant 0 : i32
    return %arg0, %c0_i32, %arg1 : i32, i32, i32
  }
  func.func @transform_1(%arg0: i32, %arg1: i32) -> (i32, i32, i32) {
    %c0_i32 = arith.constant 0 : i32
    %c0_i32_0 = arith.constant 0 : i32
    return %arg0, %c0_i32, %arg1 : i32, i32, i32
  }
}

</mosaic_0001>

<bundles_post_ra>
// kernel: tpu_custom_call.1
= control target key start
LH: loop header
LB: loop body
LE: loop exit
PB: predicated region body
PF: predicated region fallthrough
CT: control target
= control target key end

     0   :  { %6 = vsyncpa [#allocation3], 0  ;;  %s644_s0 = inlined_call_operand.hbm [shape: f32[2,4,256], index: 0, kind: input, shape index: {}]   ;;  %s645_s1 = inlined_call_operand.hbm [shape: f32[2,4,256], index: 1, kind: output, shape index: {}]  }
   0x1   :  { %8 = vsyncpa [#allocation3 + $0x1], 0 }
   0x2   :  { %9 = vsyncpa [#allocation4], 0 }
   0x3   :  { %11 = vsyncpa [#allocation4 + $0x1], 0  ;;  %s517_s6 = smov 0   ;;  %s519_s7 = smov 0  }
   0x4   :  { %s521_s8 = smov 0   ;;  %s523_s9 = smov 0  }
   0x5   :  { %s525_s10 = smov 0   ;;  %s527_s11 = smov 0  }
   0x6 LB: > { %s310_s12 = sadd.s32 4294967295, %s505_s11   ;;  %s311_s13 = sadd.s32 4294967294, %s505_s11   ;;  %s505_s11 = sphi %s527_s11, %s17_s11   ;;  %s501_s10 = sphi %s525_s10, %s654_s10   ;;  %s497_s9 = sphi %s523_s9, %s653_s9   ;;  %s493_s8 = sphi %s521_s8, %s652_s8   ;;  %s489_s7 = sphi %s519_s7, %s651_s7   ;;  %s485_s6 = sphi %s517_s6, %s650_s6  }
   0x7   : > { %s29_s14 = sadd.s32 1, %s501_s10  ;;  %s38_s15 = sadd.s32 1, %s493_s8 }
   0x8   : > { %p31_p0 = scmp.ge.s32.totalorder %s29_s14, 2  ;;  %p45_p1 = scmp.ne.s32.totalorder %s493_s8, %s489_s7 }
   0x9   : > { %p46_p2 = scmp.eq.s32.totalorder %s505_s11, 0  ;;  %p51_p3 = scmp.ne.s32.totalorder %s489_s7, %s485_s6 }
   0xa   : > { %s656_s14 = smov (%p31_p0, %s29_s14), 0  ;;  %p52_p5 = scmp.eq.s32.totalorder %s310_s12, 0 }
   0xb   : > { %p558_p4 = por %p46_p2, %p45_p1  ;;  %s33_s17 = ssub.s32 %s501_s10, %s656_s14 }
   0xc   : > { %p77_p6 = scmp.eq.s32.totalorder %s310_s12, 1  ;;  %p36_p7 = scmp.eq.s32.totalorder %s33_s17, 0 }
   0xd   : > { %p564_p8 = por %p52_p5, %p51_p3  ;;  %p83_p10 = scmp.eq.s32.totalorder %s311_s13, 1 }
   0xe   : > { %p568_p9 = por %p77_p6, %p45_p1  ;;  %p313_p12 = scmp.ge.s32.totalorder %s505_s11, 2 }
   0xf   : > { %s573_s20 = scalar_select %p36_p7, %s493_s8, %s38_s15  }
  0x10   : > { %p575_p11 = por %p83_p10, %p51_p3  ;;  %p339_p13 = scmp.lt.s32.totalorder %s505_s11, 2 }
  0x11   : > { %s103_s22 = sand.u32 1, %s493_s8   ;;  %s325_s24 = sshll.u32 %s501_s10, 3 }
  0x12   : > { %s314_s23 = sshll.u32 %s103_s22, 3  ;;  %s114_s27 = scalar_lea.hbm %s644_s0, %s325_s24 }
  0x13   : > { %s107_s28 = scalar_lea.vmem [#allocation2], %s314_s23  ;;  %s116_s30 = sshll.u32 %s114_s27, 4  ;;  %s117_s30 = int_to_ptr.hbm [resolvable:$true] %s116_s30 }
  0x14   : > { %s118_s29 = sshll.u32 %s107_s28, 4  ;;  %p332_p0 = pnand %p339_p13, %p558_p4  ;;  %s119_s29 = int_to_ptr.vmem [resolvable:$true] %s118_s29 }
  0x15   : > { %p317_p1 = scmp.ge.s32.totalorder %s505_s11, 1  ;;  %p123_p2 = scmp.lt.s32.totalorder %s505_s11, 3 }
  0x16   : > { %s104_s2 = scalar_lea.sflag [#allocation3], %s103_s22 }
  0x17   : > { %334 = dma.hbm_to_vmem [thread:$0]  (!%p332_p0), %s117_s30, 128, %s119_s29, %s104_s2  }
  0x18   : > { %p124_p3 = pnand %p317_p1, %p123_p2 }
  0x19   : > { %s591_s3 = sand.u32 (!%p124_p3), 1, %s489_s7  }
  0x1a   : > { %127 = sbr.rel (%p124_p3) target bundleno = 85 (0x55), region = 24  ;;  %s318_s4 = sshll.u32 (!%p124_p3), %s591_s3, 3 }
  0x1b   : > { %s130_s5 = scalar_lea.sflag (!%p124_p3), [#allocation3], %s591_s3  ;;  %s133_s12 = scalar_lea.vmem (!%p124_p3), [#allocation2], %s318_s4 }
  0x1f   : > { %476 = dma.done.wait (%p564_p8), %s130_s5, 128  }
  0x20   : > { %478 = vsyncadd (%p564_p8), %s130_s5, 4294967168  ;;  %v155_v0 = vld [vmem:[%s133_s12] sm:$0xff]  ;;  %vm163_vm0 = vcmask 1043456   ;;  %s326_s13 = sshll.u32 %s497_s9, 3  ;;  %s152_s18 = scalar_lea.vmem [#allocation5], %s318_s4 }
  0x21   : > { %v156_v1 = vmul.f32 %v155_v0, %v155_v0  ;;  %s221_s17 = scalar_lea.hbm %s645_s1, %s326_s13  ;;  %s223_s9 = sshll.u32 %s152_s18, 4  ;;  %s224_s9 = int_to_ptr.vmem [resolvable:$true] %s223_s9 }
  0x22   : > { %s225_s22 = sshll.u32 %s221_s17, 4  ;;  %s208_s23 = scalar_lea.sflag [#allocation4], %s591_s3  ;;  %s226_s22 = int_to_ptr.hbm [resolvable:$true] %s225_s22 }
  0x23   : > { %158 = vst [vmem:[#allocation1] ss:$2 sm:$0xff] %v156_v1  ;;  %s437_s24 = sshra.s32 %s226_s22, 4  ;;  %s443_s28 = scalar_lea.hbm %s645_s1, 16  ;;  %s438_s24 = int_to_ptr.hbm [resolvable:$true] %s437_s24 }
  0x24   : > { %s439_s25 = scalar_lea.hbm %s438_s24, 8  ;;  %p444_p7 = scmp.lt.s32.totalorder %s438_s24, %s645_s1 }
  0x25   : > { %p440_p4 = scmp.ne.s32.totalorder %s438_s24, %s439_s25  ;;  %p445_p8 = scmp.lt.s32.totalorder %s443_s28, %s439_s25 }
  0x27   : > { %p441_p5 = pnand %p440_p4, %p568_p9  ;;  %p446_p10 = por %p445_p8, %p444_p7 }
  0x29   : > { %p442_p6 = pneg %p441_p5 }
  0x2a   : > { %v159_v2 = vld.sshfl [vmem:[#allocation1] sm:$0xff pattern:$0x75316420]  ;;  %v160_v3 = vld.sshfl [vmem:[#allocation1 + $0x8] sm:$0xff pattern:$0x75316420] }
  0x2b   : > { %v164_v4 = vsel %vm163_vm0, %v159_v2, 0.0  ;;  %v171_v5 = vsel %vm163_vm0, %v160_v3, 0.0  ;;  %p447_p13 = pnand %p446_p10, %p442_p6 }
  0x2c   : > { %v165_v6 = vrot.slane %v164_v4, 4  ;;  %v172_v7 = vrot.slane %v171_v5, 4 }
  0x2e   : > { %v166_v8 = vadd.f32 %v165_v6, %v164_v4  ;;  %v173_v9 = vadd.f32 %v172_v7, %v171_v5 }
  0x30   : > { %v167_v10 = vrot.slane %v166_v8, 2  ;;  %v174_v11 = vrot.slane %v173_v9, 2 }
  0x32   : > { %v168_v12 = vadd.f32 %v167_v10, %v166_v8  ;;  %v175_v13 = vadd.f32 %v174_v11, %v173_v9 }
  0x34   : > { %v169_v14 = vrot.slane %v168_v12, 1  ;;  %v176_v15 = vrot.slane %v175_v13, 1 }
  0x36   : > { %v170_v16 = vadd.f32 %v169_v14, %v168_v12  ;;  %v177_v17 = vadd.f32 %v176_v15, %v175_v13 }
  0x38   : > { %v178_v18 = vmax.f32 %v170_v16, 1e-24  ;;  %v179_v19 = vmax.f32 %v177_v17, 1e-24 }
  0x3a   : > { %389 = vrsqrt.f32 %v178_v18  ;;  %vm196_vm3 = vweird.f32 %v179_v19  ;;  %vm186_vm5 = vweird.f32 %v178_v18 }
  0x3b   : > { %391 = vrsqrt.f32 %v179_v19 }
  0x40   : > { %v390_v20 = vpop.eup %389 }
  0x41   : > { %v392_v21 = vpop.eup %391  ;;  %v181_v22 = vmul.f32 %v390_v20, %v178_v18  ;;  %vm187_vm2 = vweird.f32 %v390_v20 }
  0x42   : > { %v191_v23 = vmul.f32 %v392_v21, %v179_v19  ;;  %vm197_vm1 = vweird.f32 %v392_v21  ;;  %vm188_vm6 = vmor %vm186_vm5, %vm187_vm2 }
  0x43   : > { %v182_v24 = vmul.f32 %v390_v20, %v181_v22  ;;  %vm198_vm4 = vmor %vm196_vm3, %vm197_vm1 }
  0x44   : > { %v192_v25 = vmul.f32 %v392_v21, %v191_v23 }
  0x45   : > { %v183_v26 = vmul.f32 0.5, %v182_v24 }
  0x46   : > { %v193_v27 = vmul.f32 0.5, %v192_v25 }
  0x47   : > { %v184_v28 = vsub.f32 1.5, %v183_v26 }
  0x48   : > { %v194_v29 = vsub.f32 1.5, %v193_v27 }
  0x49   : > { %v185_v30 = vmul.f32 %v390_v20, %v184_v28 }
  0x4a   : > { %v195_v31 = vmul.f32 %v392_v21, %v194_v29 }
  0x4b   : > { %v189_v34 = vsel %vm188_vm6, %v390_v20, %v185_v30 }
  0x4c   : > { %v199_v32 = vsel %vm198_vm4, %v392_v21, %v195_v31 }
  0x4d   : > { %v202_v33 = vrot.slane %v199_v32, 4 }
  0x4f   : > { %v203_v35 = vsel %vm163_vm0, %v189_v34, %v202_v33 }
  0x50   : > { %v205_v36 = vmul.f32 %v203_v35, %v155_v0 }
  0x52   : > { %206 = vst [vmem:[%s152_s18] sm:$0xff] %v205_v36 }
  0x53   : > { %450 = shalt.err (!%p447_p13)
}
  0x54   : > { %329 = dma.vmem_to_hbm [thread:$0]  (%p568_p9), %s224_s9, 128, %s226_s22, %s208_s23  }
  0x55 PF: > { %s237_s2 = sand.u32 1, %s485_s6   ;;  %p336_p0 = pnand %p313_p12, %p575_p11 }
  0x56   : > { %s238_s3 = scalar_lea.sflag [#allocation4], %s237_s2 }
  0x57   : > { %p337_p1 = pneg %p336_p0 }
  0x59   : > { %480 = dma.done.wait (%p337_p1), %s238_s3, 128  }
  0x5a   : > { %482 = vsyncadd (%p337_p1), %s238_s3, 4294967168  ;;  %s17_s11 = sadd.s32 1, %s505_s11   ;;  %s650_s6 = smov %s489_s7 }
  0x5b   : > { %p14_p2 = scmp.ge.s32.totalorder %s17_s11, 4   ;;  %s651_s7 = smov %s493_s8 }
  0x5c   : > { %s652_s8 = smov %s573_s20  ;;  %s653_s9 = smov %s501_s10 }
  0x5d   : > { %s654_s10 = smov %s656_s14  ;;  %16 = sbr.rel (!%p14_p2) target bundleno = 6 (0x6), region = 69 }
  0x62   :  { %244 = vsyncpa [#allocation3], 1 }
  0x63   :  { %246 = vsyncpa [#allocation3 + $0x1], 1 }
  0x64   :  { %247 = vsyncpa [#allocation4], 1 }
  0x65   :  { %249 = vsyncpa [#allocation4 + $0x1], 1 }

</bundles_post_ra>
